<compile_context>
chip_gen: v7x
topology: tpu7x:2x2x1
jax: 0.10.0
libtpu: 0.0.40
codegen_flags: <defaults>
</compile_context>

<pallas_src>
import functools

import jax
import jax.numpy as jnp
from jax.experimental import pallas as pl
from jax.experimental.pallas import tpu as pltpu


def _round_up(n, m):
    return ((n + m - 1) // m) * m


# --------------------------------- kernels ---------------------------------

def _layer_norm_f32(x_ref, gamma_ref, beta_ref, eps):
    """Row-wise LayerNorm in f32 (stats + affine)."""
    x = x_ref[...].astype(jnp.float32)
    mean = jnp.mean(x, axis=-1, keepdims=True)
    xc = x - mean
    var = jnp.mean(xc * xc, axis=-1, keepdims=True)
    xn = xc * jax.lax.rsqrt(var + eps)
    return (xn * gamma_ref[...].astype(jnp.float32)
            + beta_ref[...].astype(jnp.float32))


def _ffm_resident_kernel(x_ref, gamma_ref, beta_ref, w1t_ref, b1_ref, w2_ref,
                         b2_ref, o_ref, *, eps):
    """Weight-resident path: grid = (row_tiles,). w1t/w2 have constant index
    maps -> fetched from HBM once, reused across every row tile."""
    xn = _layer_norm_f32(x_ref, gamma_ref, beta_ref, eps).astype(w1t_ref.dtype)
    # First GEMM: (tm, D) x (H, D) contracting the last dim of both (w1 stored
    # transposed so its rows are contiguous in HBM/VMEM).
    h = jax.lax.dot_general(xn, w1t_ref[...],
                            dimension_numbers=(((1,), (1,)), ((), ())),
                            preferred_element_type=jnp.float32)
    h = h + b1_ref[...].astype(jnp.float32)
    h = h * jax.nn.sigmoid(h)            # SiLU (sigmoid goes to EUP)
    # Dropout(p=0) is an identity -> no-op.
    y = jnp.dot(h.astype(w2_ref.dtype), w2_ref[...],
                preferred_element_type=jnp.float32)
    o_ref[...] = (y + b2_ref[...].astype(jnp.float32)).astype(o_ref.dtype)


def _ffm_chunked_kernel(x_ref, gamma_ref, beta_ref, w1t_ref, b1_ref, w2_ref,
                        b2_ref, o_ref, xn_ref, acc_ref, *, eps):
    """H-chunked path: grid = (row_tiles, h_chunks). The h-chunk axis is the
    reduction axis of the second GEMM; the output block is resident across it
    (f32 VMEM accumulator, init/finalize via pl.when)."""
    k = pl.program_id(1)

    @pl.when(k == 0)
    def _():
        xn_ref[...] = _layer_norm_f32(x_ref, gamma_ref, beta_ref,
                                      eps).astype(xn_ref.dtype)
        acc_ref[...] = jnp.zeros_like(acc_ref)

    # (tm, D) x (th, D) contracting last dims -> (tm, th); f32 MXU accumulation.
    h = jax.lax.dot_general(xn_ref[...], w1t_ref[...],
                            dimension_numbers=(((1,), (1,)), ((), ())),
                            preferred_element_type=jnp.float32)
    h = h + b1_ref[...].astype(jnp.float32)
    h = h * jax.nn.sigmoid(h)            # SiLU
    # Dropout(p=0) is an identity -> no-op.
    acc_ref[...] += jnp.dot(h.astype(w2_ref.dtype), w2_ref[...],
                            preferred_element_type=jnp.float32)

    @pl.when(k == pl.num_programs(1) - 1)
    def _():
        o_ref[...] = (acc_ref[...]
                      + b2_ref[...].astype(jnp.float32)).astype(o_ref.dtype)


# --------------------------------- wrapper ----------------------------------

def feed_forward_module(x, gamma, beta, w1, b1, w2, b2, *, eps=1e-5,
                        tile_rows=None, tile_h=None, compute_dtype=None,
                        weight_resident=None):
    """x: (B, T, D). gamma/beta: (D,), w1: (D, H), b1: (H,), w2: (H, D), b2: (D,).

    tile_rows / tile_h: optional overrides (auto-derived from VMEM otherwise).
    compute_dtype:      optionally cast weights (e.g. jnp.bfloat16) for the MXU;
                        accumulation stays f32.
    weight_resident:    None = auto, True/False = force path.
    """
    B, T, D = x.shape
    H = w1.shape[1]
    N = B * T
    xf = x.reshape(N, D)

    # Contiguous-row layout for the first GEMM's weight chunks: (H, D).
    w1t = jnp.transpose(w1)
    w2m = w2
    if compute_dtype is not None:
        w1t = w1t.astype(compute_dtype)
        w2m = w2m.astype(compute_dtype)

    xb = xf.dtype.itemsize
    ob = xf.dtype.itemsize
    wb = w1t.dtype.itemsize

    # ---------------- generation-aware VMEM budget ----------------
    try:
        phys = int(pltpu.get_tpu_info().vmem_capacity_bytes)
    except Exception:
        phys = 64 * 1024 * 1024              # conservative fallback (v7x-sized)
    vmem_limit = int(min(phys * 0.8, phys - 8 * 1024 * 1024))
    vmem_limit = max(vmem_limit, 32 * 1024 * 1024)
    budget = vmem_limit - 2 * 1024 * 1024    # headroom for Mosaic internal scratch

    n_pad = _round_up(max(N, 1), 8)

    def _resident_bytes(tm):
        # x + out blocks (double-buffered), resident weights (counted 2x to be
        # safe), f32 h intermediate headroom, f32 y temp.
        return (2 * tm * D * (xb + ob)
                + 2 * (2 * D * H + H + 3 * D) * wb
                + 2 * tm * H * 4
                + tm * D * 4)

    def _chunked_bytes(tm, th):
        # x/out blocks, double-buffered weight/bias chunks, xn + acc scratch,
        # f32 h-chunk intermediate headroom.
        return (2 * tm * D * (xb + ob)
                + 2 * (2 * D * th + th + 3 * D) * wb
                + tm * D * (wb + 4)
                + 2 * tm * th * 4)

    # ---------------- hidden-dim chunk (chunked path only) ----------------
    th_req = 1024 if tile_h is None else int(tile_h)
    if H % 128 == 0 and H > th_req:
        th = max(128, (min(th_req, H) // 128) * 128)
        while H % th:
            th -= 128
    else:
        th = H   # NOTE: if H is large and not a multiple of 128 this may be big.
    if tile_h is None and H % 128 == 0:
        # Shrink th (keeping H % th == 0) if even a modest row tile would not fit.
        while th > 128 and _chunked_bytes(min(128, n_pad), th) > budget:
            t = th - 128
            while t >= 128 and H % t:
                t -= 128
            if t < 128:
                break
            th = t

    # ---------------- row tile + path selection ----------------
    if tile_rows is not None:
        tm = max(8, min(_round_up(int(tile_rows), 8), n_pad))
    else:
        tm = None

    probe_tm = tm if tm is not None else min(256, n_pad)
    if weight_resident is None:
        use_resident = _resident_bytes(probe_tm) <= budget
    else:
        use_resident = bool(weight_resident)

    if tm is None:
        cap = min(1024, n_pad)
        fits = _resident_bytes if use_resident else (lambda t: _chunked_bytes(t, th))
        tm = 8
        t = cap
        while t >= 8:
            if fits(t) <= budget:
                tm = t
                break
            t -= 8
        # Megacore (v7x has 2 TensorCores sharded over the "parallel" axis):
        # prefer at least 2 row tiles when there are enough rows.
        if N >= 16:
            tm = min(tm, _round_up(-(-N // 2), 8))

    num_row_tiles = pl.cdiv(N, tm)

    gamma2 = gamma.reshape(1, D)
    beta2 = beta.reshape(1, D)
    b1_2 = b1.reshape(1, H)
    b2_2 = b2.reshape(1, D)

    weight_stream = 1 if use_resident else int(num_row_tiles)
    cost = pl.CostEstimate(
        flops=4 * N * D * H,                              # two GEMMs
        transcendentals=N * H,                            # sigmoid
        bytes_accessed=int(2 * N * D * xb                 # x read + y write
                           + weight_stream * 2 * D * H * wb),
    )

    if use_resident:
        out = pl.pallas_call(
            functools.partial(_ffm_resident_kernel, eps=eps),
            out_shape=jax.ShapeDtypeStruct((N, D), x.dtype),
            grid_spec=pltpu.PrefetchScalarGridSpec(
                num_scalar_prefetch=0,
                grid=(num_row_tiles,),
                in_specs=[
                    pl.BlockSpec((tm, D), lambda i: (i, 0)),   # x row tile
                    pl.BlockSpec((1, D), lambda i: (0, 0)),    # gamma
                    pl.BlockSpec((1, D), lambda i: (0, 0)),    # beta
                    pl.BlockSpec((H, D), lambda i: (0, 0)),    # w1^T (resident)
                    pl.BlockSpec((1, H), lambda i: (0, 0)),    # b1
                    pl.BlockSpec((H, D), lambda i: (0, 0)),    # w2   (resident)
                    pl.BlockSpec((1, D), lambda i: (0, 0)),    # b2
                ],
                out_specs=pl.BlockSpec((tm, D), lambda i: (i, 0)),
            ),
            compiler_params=pltpu.CompilerParams(
                dimension_semantics=("parallel",),
                vmem_limit_bytes=vmem_limit,
            ),
            cost_estimate=cost,
        )(xf, gamma2, beta2, w1t, b1_2, w2m, b2_2)
    else:
        num_h_chunks = H // th
        out = pl.pallas_call(
            functools.partial(_ffm_chunked_kernel, eps=eps),
            out_shape=jax.ShapeDtypeStruct((N, D), x.dtype),
            grid_spec=pltpu.PrefetchScalarGridSpec(
                num_scalar_prefetch=0,
                grid=(num_row_tiles, num_h_chunks),
                in_specs=[
                    pl.BlockSpec((tm, D), lambda i, k: (i, 0)),   # x row tile
                    pl.BlockSpec((1, D), lambda i, k: (0, 0)),    # gamma
                    pl.BlockSpec((1, D), lambda i, k: (0, 0)),    # beta
                    pl.BlockSpec((th, D), lambda i, k: (k, 0)),   # w1^T chunk (contiguous rows)
                    pl.BlockSpec((1, th), lambda i, k: (0, k)),   # b1 chunk
                    pl.BlockSpec((th, D), lambda i, k: (k, 0)),   # w2 chunk
                    pl.BlockSpec((1, D), lambda i, k: (0, 0)),    # b2
                ],
                out_specs=pl.BlockSpec((tm, D), lambda i, k: (i, 0)),
                scratch_shapes=[
                    pltpu.VMEM((tm, D), w1t.dtype),    # cached LayerNorm output
                    pltpu.VMEM((tm, D), jnp.float32),  # f32 output accumulator
                ],
            ),
            compiler_params=pltpu.CompilerParams(
                dimension_semantics=("parallel", "arbitrary"),
                vmem_limit_bytes=vmem_limit,
            ),
            cost_estimate=cost,
        )(xf, gamma2, beta2, w1t, b1_2, w2m, b2_2)

    return out.reshape(B, T, D)


# --------------------------------- reference ---------------------------------

def _reference(x, gamma, beta, w1, b1, w2, b2, eps=1e-5):
    mean = jnp.mean(x, axis=-1, keepdims=True)
    var = jnp.mean((x - mean) ** 2, axis=-1, keepdims=True)
    xn = (x - mean) * jax.lax.rsqrt(var + eps) * gamma + beta
    h = xn @ w1 + b1
    h = h * jax.nn.sigmoid(h)
    return h @ w2 + b2


def _make_params(key, D, H):
    kg, kb, kw1, kb1, kw2, kb2 = jax.random.split(key, 6)
    gamma = jnp.ones((D,), jnp.float32) + 0.01 * jax.random.normal(kg, (D,))
    beta = 0.01 * jax.random.normal(kb, (D,))
    w1 = jax.random.normal(kw1, (D, H), dtype=jnp.float32) / jnp.sqrt(D)
    b1 = 0.01 * jax.random.normal(kb1, (H,))
    w2 = jax.random.normal(kw2, (H, D), dtype=jnp.float32) / jnp.sqrt(H)
    b2 = 0.01 * jax.random.normal(kb2, (D,))
    return gamma, beta, w1, b1, w2, b2


if __name__ == "__main__":
    key = jax.random.PRNGKey(0)

    # Config A: module-scale demo (batch=2, seq=8, dim=32, mult=4); auto tiling
    # selects the weight-resident single-axis path.
    B, T, D, MULT = 2, 8, 32, 4
    H = D * MULT
    kx, kp, key = jax.random.split(key, 3)
    x = jax.random.normal(kx, (B, T, D), dtype=jnp.float32)
    params = _make_params(kp, D, H)
    y = jax.block_until_ready(feed_forward_module(x, *params))
    y_ref = _reference(x, *params)
    assert y.shape == (B, T, D)
    assert jnp.allclose(y, y_ref, atol=1e-4, rtol=1e-4), "config A mismatch"

    # Config B: forced H-chunked accumulator path with small tiles to exercise
    # multiple row tiles, the ragged last row block, and the k-reduction.
    B, T, D, MULT = 2, 25, 128, 4
    H = D * MULT
    kx, kp, key = jax.random.split(key, 3)
    x = jax.random.normal(kx, (B, T, D), dtype=jnp.float32)
    params = _make_params(kp, D, H)
    y = jax.block_until_ready(
        feed_forward_module(x, *params, tile_rows=16, tile_h=128,
                            weight_resident=False))
    y_ref = _reference(x, *params)
    assert y.shape == (B, T, D)
    assert jnp.allclose(y, y_ref, atol=5e-3, rtol=5e-3), "config B mismatch"

    # Config C: bf16-weight compute path (recommended on v6e/v7x); f32 MXU
    # accumulation. Compared against the f32 reference with a quantization-
    # appropriate tolerance.
    B, T, D, MULT = 2, 64, 256, 4
    H = D * MULT
    kx, kp, key = jax.random.split(key, 3)
    x = jax.random.normal(kx, (B, T, D), dtype=jnp.float32)
    params = _make_params(kp, D, H)
    y = jax.block_until_ready(
        feed_forward_module(x, *params, compute_dtype=jnp.bfloat16))
    y_ref = _reference(x, *params)
    err = jnp.abs(y - y_ref)
    assert y.shape == (B, T, D)
    assert float(jnp.mean(err)) < 5e-2 and float(jnp.max(err)) < 0.3, "config C mismatch"

    print("KERNEL_OK")
</pallas_src>

<mosaic_0001>
module attributes {stable_mosaic.version = 11 : i64} {
  func.func @_ffm_resident_kernel(%arg0: i32, %arg1: memref<8x32xf32, #tpu.memory_space<vmem>>, %arg2: memref<1x32xf32, #tpu.memory_space<vmem>>, %arg3: memref<1x32xf32, #tpu.memory_space<vmem>>, %arg4: memref<128x32xf32, #tpu.memory_space<vmem>>, %arg5: memref<1x128xf32, #tpu.memory_space<vmem>>, %arg6: memref<128x32xf32, #tpu.memory_space<vmem>>, %arg7: memref<1x32xf32, #tpu.memory_space<vmem>>, %arg8: memref<8x32xf32, #tpu.memory_space<vmem>>) attributes {dimension_semantics = [#tpu.dimension_semantics<parallel>], iteration_bounds = array<i64: 2>, scalar_prefetch = 0 : i64, scratch_operands = 0 : i64, tpu.core_type = #tpu.core_type<tc>, window_params = [{transform_indices = @transform_0, window_bounds = array<i64: 8, 32>}, {pipeline_mode = #tpu.pipeline_mode<synchronous>, transform_indices = @transform_1, window_bounds = array<i64: 1, 32>}, {pipeline_mode = #tpu.pipeline_mode<synchronous>, transform_indices = @transform_2, window_bounds = array<i64: 1, 32>}, {pipeline_mode = #tpu.pipeline_mode<synchronous>, transform_indices = @transform_3, window_bounds = array<i64: 128, 32>}, {pipeline_mode = #tpu.pipeline_mode<synchronous>, transform_indices = @transform_4, window_bounds = array<i64: 1, 128>}, {pipeline_mode = #tpu.pipeline_mode<synchronous>, transform_indices = @transform_5, window_bounds = array<i64: 128, 32>}, {pipeline_mode = #tpu.pipeline_mode<synchronous>, transform_indices = @transform_6, window_bounds = array<i64: 1, 32>}, {transform_indices = @transform_7, window_bounds = array<i64: 8, 32>}]} {
    %c0 = arith.constant 0 : index
    %c0_0 = arith.constant 0 : index
    %0 = vector.load %arg1[%c0, %c0_0] : memref<8x32xf32, #tpu.memory_space<vmem>>, vector<8x32xf32>
    %cst = arith.constant dense<0.000000e+00> : vector<8xf32>
    %1 = vector.multi_reduction <add>, %0, %cst [1] : vector<8x32xf32> to vector<8xf32>
    %2 = vector.shape_cast %1 : vector<8xf32> to vector<8x1xf32>
    %cst_1 = arith.constant 3.200000e+01 : f32
    %3 = vector.broadcast %cst_1 : f32 to vector<8x1xf32>
    %4 = arith.divf %2, %3 : vector<8x1xf32>
    %5 = vector.broadcast %4 : vector<8x1xf32> to vector<8x32xf32>
    %6 = arith.subf %0, %5 : vector<8x32xf32>
    %7 = arith.mulf %6, %6 : vector<8x32xf32>
    %cst_2 = arith.constant dense<0.000000e+00> : vector<8xf32>
    %8 = vector.multi_reduction <add>, %7, %cst_2 [1] : vector<8x32xf32> to vector<8xf32>
    %9 = vector.shape_cast %8 : vector<8xf32> to vector<8x1xf32>
    %cst_3 = arith.constant 3.200000e+01 : f32
    %10 = vector.broadcast %cst_3 : f32 to vector<8x1xf32>
    %11 = arith.divf %9, %10 : vector<8x1xf32>
    %cst_4 = arith.constant 9.99999974E-6 : f32
    %12 = vector.broadcast %cst_4 : f32 to vector<8x1xf32>
    %13 = arith.addf %11, %12 : vector<8x1xf32>
    %14 = math.rsqrt %13 : vector<8x1xf32>
    %15 = vector.broadcast %14 : vector<8x1xf32> to vector<8x32xf32>
    %16 = arith.mulf %6, %15 : vector<8x32xf32>
    %c0_5 = arith.constant 0 : index
    %c0_6 = arith.constant 0 : index
    %17 = vector.load %arg2[%c0_5, %c0_6] : memref<1x32xf32, #tpu.memory_space<vmem>>, vector<1x32xf32>
    %18 = vector.broadcast %17 : vector<1x32xf32> to vector<8x32xf32>
    %19 = arith.mulf %16, %18 : vector<8x32xf32>
    %c0_7 = arith.constant 0 : index
    %c0_8 = arith.constant 0 : index
    %20 = vector.load %arg3[%c0_7, %c0_8] : memref<1x32xf32, #tpu.memory_space<vmem>>, vector<1x32xf32>
    %21 = vector.broadcast %20 : vector<1x32xf32> to vector<8x32xf32>
    %22 = arith.addf %19, %21 : vector<8x32xf32>
    %c0_9 = arith.constant 0 : index
    %c0_10 = arith.constant 0 : index
    %23 = vector.load %arg4[%c0_9, %c0_10] : memref<128x32xf32, #tpu.memory_space<vmem>>, vector<128x32xf32>
    %cst_11 = arith.constant dense<0.000000e+00> : vector<8x128xf32>
    %24 = tpu.matmul %22, %23, %cst_11 {dimension_numbers = #tpu.dot_dimension_numbers<[1], [1], [0], [0], [0, 0, 1, 0], [], []>} : vector<8x32xf32>, vector<128x32xf32>, vector<8x128xf32> -> vector<8x128xf32>
    %c0_12 = arith.constant 0 : index
    %c0_13 = arith.constant 0 : index
    %25 = vector.load %arg5[%c0_12, %c0_13] : memref<1x128xf32, #tpu.memory_space<vmem>>, vector<1x128xf32>
    %26 = vector.broadcast %25 : vector<1x128xf32> to vector<8x128xf32>
    %27 = arith.addf %24, %26 : vector<8x128xf32>
    %28 = arith.negf %27 : vector<8x128xf32>
    %29 = math.exp %28 : vector<8x128xf32>
    %cst_14 = arith.constant 1.000000e+00 : f32
    %30 = vector.broadcast %cst_14 : f32 to vector<8x128xf32>
    %31 = arith.addf %30, %29 : vector<8x128xf32>
    %32 = arith.divf %30, %31 : vector<8x128xf32>
    %33 = arith.mulf %27, %32 : vector<8x128xf32>
    %c0_15 = arith.constant 0 : index
    %c0_16 = arith.constant 0 : index
    %34 = vector.load %arg6[%c0_15, %c0_16] : memref<128x32xf32, #tpu.memory_space<vmem>>, vector<128x32xf32>
    %cst_17 = arith.constant dense<0.000000e+00> : vector<8x32xf32>
    %35 = tpu.matmul %33, %34, %cst_17 {dimension_numbers = #tpu.dot_dimension_numbers<[1], [0], [0], [1], [0, 0, 1, 1], [], []>} : vector<8x128xf32>, vector<128x32xf32>, vector<8x32xf32> -> vector<8x32xf32>
    %c0_18 = arith.constant 0 : index
    %c0_19 = arith.constant 0 : index
    %36 = vector.load %arg7[%c0_18, %c0_19] : memref<1x32xf32, #tpu.memory_space<vmem>>, vector<1x32xf32>
    %37 = vector.broadcast %36 : vector<1x32xf32> to vector<8x32xf32>
    %38 = arith.addf %35, %37 : vector<8x32xf32>
    %c0_20 = arith.constant 0 : index
    %c0_21 = arith.constant 0 : index
    %39 = vector.load %arg8[%c0_20, %c0_21] : memref<8x32xf32, #tpu.memory_space<vmem>>, vector<8x32xf32>
    tpu.vector_store %arg8[%c0_20, %c0_21], %38 {strides = array<i32>} : memref<8x32xf32, #tpu.memory_space<vmem>>, vector<8x32xf32>,
    return
  }
  func.func @transform_0(%arg0: i32) -> (i32, i32) {
    %c0_i32 = arith.constant 0 : i32
    %c0_i32_0 = arith.constant 0 : i32
    return %arg0, %c0_i32 : i32, i32
  }
  func.func @transform_1(%arg0: i32) -> (i32, i32) {
    %c0_i32 = arith.constant 0 : i32
    %c0_i32_0 = arith.constant 0 : i32
    %c0_i32_1 = arith.constant 0 : i32
    return %c0_i32, %c0_i32_0 : i32, i32
  }
  func.func @transform_2(%arg0: i32) -> (i32, i32) {
    %c0_i32 = arith.constant 0 : i32
    %c0_i32_0 = arith.constant 0 : i32
    %c0_i32_1 = arith.constant 0 : i32
    return %c0_i32, %c0_i32_0 : i32, i32
  }
  func.func @transform_3(%arg0: i32) -> (i32, i32) {
    %c0_i32 = arith.constant 0 : i32
    %c0_i32_0 = arith.constant 0 : i32
    %c0_i32_1 = arith.constant 0 : i32
    return %c0_i32, %c0_i32_0 : i32, i32
  }
  func.func @transform_4(%arg0: i32) -> (i32, i32) {
    %c0_i32 = arith.constant 0 : i32
    %c0_i32_0 = arith.constant 0 : i32
    %c0_i32_1 = arith.constant 0 : i32
    return %c0_i32, %c0_i32_0 : i32, i32
  }
  func.func @transform_5(%arg0: i32) -> (i32, i32) {
    %c0_i32 = arith.constant 0 : i32
    %c0_i32_0 = arith.constant 0 : i32
    %c0_i32_1 = arith.constant 0 : i32
    return %c0_i32, %c0_i32_0 : i32, i32
  }
  func.func @transform_6(%arg0: i32) -> (i32, i32) {
    %c0_i32 = arith.constant 0 : i32
    %c0_i32_0 = arith.constant 0 : i32
    %c0_i32_1 = arith.constant 0 : i32
    return %c0_i32, %c0_i32_0 : i32, i32
  }
  func.func @transform_7(%arg0: i32) -> (i32, i32) {
    %c0_i32 = arith.constant 0 : i32
    %c0_i32_0 = arith.constant 0 : i32
    return %arg0, %c0_i32 : i32, i32
  }
}

</mosaic_0001>

<bundles_post_ra>
// kernel: tpu_custom_call.1
= control target key start
LH: loop header
LB: loop body
LE: loop exit
PB: predicated region body
PF: predicated region fallthrough
CT: control target
= control target key end

     0   :  { %12 = vsyncpa [#allocation3], 0  ;;  %s1222_s0 = inlined_call_operand.vmem [shape: f32[16,32], index: 0, kind: input, shape index: {}]   ;;  %s1223_s1 = inlined_call_operand.vmem [shape: f32[1,32], index: 1, kind: input, shape index: {}]   ;;  %s1224_s2 = inlined_call_operand.vmem [shape: f32[1,32], index: 2, kind: input, shape index: {}]   ;;  %s1225_s3 = inlined_call_operand.vmem [shape: f32[128,32], index: 3, kind: input, shape index: {}]   ;;  %s1226_s4 = inlined_call_operand.vmem [shape: f32[1,128], index: 4, kind: input, shape index: {}]   ;;  %s1227_s5 = inlined_call_operand.vmem [shape: f32[128,32], index: 5, kind: input, shape index: {}]   ;;  %s1228_s6 = inlined_call_operand.vmem [shape: f32[1,32], index: 6, kind: input, shape index: {}]   ;;  %s1229_s7 = inlined_call_operand.hbm [shape: f32[16,32], index: 7, kind: output, shape index: {}]  }
   0x1   :  { %14 = vsyncpa [#allocation3 + $0x1], 0  ;;  %s972_s24 = smov 0   ;;  %s974_s25 = smov 0  }
   0x2   :  { %s976_s26 = smov 0   ;;  %s978_s27 = smov 0  }
   0x3 LB: > { %s993_s28 = sadd.s32 4294967295, %s926_s27   ;;  %s624_s29 = sadd.s32 4294967294, %s926_s27   ;;  %s926_s27 = sphi %s978_s27, %s1237_s27   ;;  %s922_s26 = sphi %s976_s26, %s1236_s26   ;;  %s918_s25 = sphi %s974_s25, %s1235_s25   ;;  %s914_s24 = sphi %s972_s24, %s1234_s24  }
   0x4   : > { %s997_s30 = sadd.s32 1, %s926_s27   ;;  %s179_s8 = sadd.s32 1, %s922_s26 }
   0x5   : > { %s176_s9 = ssub.s32 %s926_s27, %s997_s30  ;;  %p189_p0 = scmp.ne.s32.totalorder %s922_s26, %s918_s25 }
   0x6   : > { %p177_p1 = scmp.eq.s32.totalorder %s176_s9, 0  ;;  %p190_p2 = scmp.eq.s32.totalorder %s993_s28, 1 }
   0x7   : > { %p195_p3 = scmp.ne.s32.totalorder %s918_s25, %s914_s24  ;;  %p196_p4 = scmp.eq.s32.totalorder %s624_s29, 1 }
   0x8   : > { %s1008_s10 = scalar_select %p177_p1, %s922_s26, %s179_s8  }
   0x9   : > { %p1010_p5 = por %p190_p2, %p189_p0  ;;  %p1014_p6 = por %p196_p4, %p195_p3 }
   0xa   : > { %p627_p7 = scmp.ge.s32.totalorder %s926_s27, 1  ;;  %p239_p8 = scmp.lt.s32.totalorder %s926_s27, 3 }
   0xc   : > { %p240_p9 = pnand %p627_p7, %p239_p8 }
   0xd   : > { %p270_p10 = scmp.lt.s32.totalorder (!%p240_p9), %s993_s28, 1  ;;  %vm275_vm0 = vcmask (!%p240_p9), 261120   ;;  %v306_v3 = vld [vmem:[%s1225_s3] sm:$0xff] (!%p240_p9)  ;;  %v307_v4 = vld [vmem:[%s1225_s3 + $0x8] sm:$0xff] (!%p240_p9)  ;;  %v928_v5 = vmov (!%p240_p9), 0.0|0.0   ;;  %v308_v7 = vld [vmem:[%s1225_s3 + $0x10] sm:$0xff] (!%p240_p9) }
   0xe   : > { %243 = sbr.rel (%p240_p9) target bundleno = 809 (0x329), region = 48  ;;  %vm1028_vm1 = vmpackc.low (!%p240_p9), %vm275_vm0, %vm275_vm0  ;;  %760 = vmatprep.subr.bf16.mxu0 (!%p240_p9), %v928_v5  ;;  %v761_v6 = vpack.c.bf16 (!%p240_p9), %v307_v4, %v306_v3  ;;  %792 = vmatprep.subr.bf16.mxu1 (!%p240_p9), %v928_v5  ;;  %v309_v8 = vld [vmem:[%s1225_s3 + $0x18] sm:$0xff] (!%p240_p9)  ;;  %v310_v10 = vld [vmem:[%s1225_s3 + $0x20] sm:$0xff] (!%p240_p9)  ;;  %vm929_vm2 = vmmov (!%p240_p9), 0   ;;  %v930_v30 = vmov (!%p240_p9), 0.0   ;;  %s267_s18 = sand.u32 (!%p240_p9), 1, %s918_s25  }
   0xf   : > { %v765_v9 = vpack.c.bf16 (!%p240_p9), %v309_v8, %v308_v7  ;;  %v311_v11 = vld [vmem:[%s1225_s3 + $0x28] sm:$0xff] (!%p240_p9)  ;;  %v312_v13 = vld [vmem:[%s1225_s3 + $0x30] sm:$0xff] (!%p240_p9)  ;;  %v313_v14 = vld [vmem:[%s1225_s3 + $0x38] sm:$0xff] (!%p240_p9)  ;;  %722 = vmatprep.mubr.msk.f32.mxu0 (!%p240_p9), %vm929_vm2, %v930_v30  ;;  %757 = vmatprep.mubr.msk.f32.mxu1 (!%p240_p9), %vm929_vm2, %v930_v30  ;;  %s628_s19 = sshll.u32 (!%p240_p9), %s267_s18, 3  ;;  %s653_s22 = sshll.u32 (!%p240_p9), %s993_s28, 7 }
  0x10   : > { %763 = vmatpush3.bf16.xpose.msk.msra.mxu0 (!%p240_p9), %vm1028_vm1, %v761_v6  ;;  %v769_v12 = vpack.c.bf16 (!%p240_p9), %v311_v11, %v310_v10  ;;  %v773_v15 = vpack.c.bf16 (!%p240_p9), %v313_v14, %v312_v13  ;;  %v314_v16 = vld [vmem:[%s1225_s3 + $0x40] sm:$0xff] (!%p240_p9)  ;;  %v315_v17 = vld [vmem:[%s1225_s3 + $0x48] sm:$0xff] (!%p240_p9)  ;;  %v316_v19 = vld [vmem:[%s1225_s3 + $0x50] sm:$0xff] (!%p240_p9)  ;;  %s269_s23 = scalar_lea.vmem (!%p240_p9), [#allocation2], %s628_s19 }
  0x11   : > { %764 = vmatprep.subr.bf16.mxu0 (!%p240_p9), %v928_v5  ;;  %v777_v18 = vpack.c.bf16 (!%p240_p9), %v315_v17, %v314_v16  ;;  %v317_v20 = vld [vmem:[%s1225_s3 + $0x58] sm:$0xff] (!%p240_p9)  ;;  %v318_v27 = vld [vmem:[%s1225_s3 + $0x60] sm:$0xff] (!%p240_p9)  ;;  %v319_v28 = vld [vmem:[%s1225_s3 + $0x68] sm:$0xff] (!%p240_p9)  ;;  %s565_s29 = sshll.u32 (!%p240_p9), %s269_s23, 4  ;;  %s1181_s29 = int_to_ptr.vmem [resolvable:$true] %s565_s29 }
  0x12   : > { %v781_v21 = vpack.c.bf16 (!%p240_p9), %v317_v20, %v316_v19  ;;  %v785_v29 = vpack.c.bf16 (!%p240_p9), %v319_v28, %v318_v27  ;;  %v320_v31 = vld [vmem:[%s1225_s3 + $0x70] sm:$0xff] (!%p240_p9)  ;;  %v321_v32 = vld [vmem:[%s1225_s3 + $0x78] sm:$0xff] (!%p240_p9)  ;;  %v630_v38 = vld [vmem:[%s1223_s1] ss:$0 sm:$0xff] (!%p240_p9)  ;;  %s864_s15 = scalar_lea.vmem (!%p240_p9), %s1181_s29, 128 }
  0x13   : > { %v789_v33 = vpack.c.bf16 (!%p240_p9), %v321_v32, %v320_v31  ;;  %v631_v40 = vld [vmem:[%s1224_s2] ss:$0 sm:$0xff] (!%p240_p9)  ;;  %v458_v44 = vld [vmem:[%s1227_s5 + $0x8] sm:$0xff] (!%p240_p9)  ;;  %v459_v46 = vld [vmem:[%s1227_s5 + $0x10] sm:$0xff] (!%p240_p9)  ;;  %p865_p11 = scmp.ne.s32.totalorder (!%p240_p9), %s1181_s29, %s864_s15 }
  0x14   : > { %v457_v43 = vld [vmem:[%s1227_s5] sm:$0xff] (!%p240_p9)  ;;  %v460_v47 = vld [vmem:[%s1227_s5 + $0x18] sm:$0xff] (!%p240_p9)  ;;  %v462_v50 = vld [vmem:[%s1227_s5 + $0x28] sm:$0xff] (!%p240_p9) }
  0x15   : > { %s271_s13 = scalar_select %p270_p10, %s993_s28, 1  ;;  %v793_v45 = vpack.c.bf16 %v458_v44, %v457_v43  ;;  %v796_v48 = vpack.c.bf16 %v460_v47, %v459_v46  ;;  %v461_v49 = vld [vmem:[%s1227_s5 + $0x20] sm:$0xff]  ;;  %v463_v52 = vld [vmem:[%s1227_s5 + $0x30] sm:$0xff]  ;;  %v464_v53 = vld [vmem:[%s1227_s5 + $0x38] sm:$0xff] }
  0x16   : > { %v799_v51 = vpack.c.bf16 %v462_v50, %v461_v49  ;;  %v802_v54 = vpack.c.bf16 %v464_v53, %v463_v52  ;;  %v465_v55 = vld [vmem:[%s1227_s5 + $0x40] sm:$0xff]  ;;  %v466_v56 = vld [vmem:[%s1227_s5 + $0x48] sm:$0xff]  ;;  %v467_v58 = vld [vmem:[%s1227_s5 + $0x50] sm:$0xff]  ;;  %p866_p12 = pnand %p865_p11, %p1010_p5  ;;  %s931_s28 = smov [#allocation2]  }
  0x17   : > { %s629_s14 = sshll.u32 %s271_s13, 3  ;;  %794 = vmatpush3.bf16.msra.mxu1 %v793_v45  ;;  %v805_v57 = vpack.c.bf16 %v466_v56, %v465_v55  ;;  %v468_v59 = vld [vmem:[%s1227_s5 + $0x58] sm:$0xff]  ;;  %v469_v61 = vld [vmem:[%s1227_s5 + $0x60] sm:$0xff]  ;;  %v470_v62 = vld [vmem:[%s1227_s5 + $0x68] sm:$0xff]  ;;  %s1179_s13 = scalar_lea.hbm %s1229_s7, %s653_s22 }
  0x18   : > { %s273_s17 = scalar_lea.vmem %s1222_s0, %s629_s14  ;;  %767 = vmatpush3.bf16.xpose.msk.msra.mxu0 %vm1028_vm1, %v765_v9  ;;  %795 = vmatprep.subr.bf16.mxu1 %v928_v5  ;;  %v808_v60 = vpack.c.bf16 %v468_v59, %v467_v58  ;;  %v811_v63 = vpack.c.bf16 %v470_v62, %v469_v61  ;;  %v632_v3 = vld [vmem:[%s1226_s4] ss:$0 sm:$0xff]  ;;  %s552_s14 = scalar_lea.sflag [#allocation3], %s267_s18 }
  0x19   : > { %v274_v0 = vld [vmem:[%s273_s17] sm:$0xff]  ;;  %768 = vmatprep.subr.bf16.mxu0 %v928_v5  ;;  %p867_p13 = pneg %p866_p12  ;;  %s868_s16 = sshll.u32 %s931_s28, 4  ;;  %s869_s16 = int_to_ptr.vmem [resolvable:$false] %s868_s16 }
  0x1a   : > { %v276_v1 = vsel %vm275_vm0, %v274_v0, 0.0  ;;  %s870_s17 = scalar_lea.vmem %s869_s16, 256  ;;  %p871_p0 = scmp.lt.s32.totalorder %s1181_s29, %s869_s16 }
  0x1b   : > { %277 = vadd.xlane.f32.xlu0 %v276_v1  ;;  %797 = vmatpush3.bf16.msra.mxu1 %v796_v48  ;;  %v472_v1 = vld [vmem:[%s1227_s5 + $0x78] sm:$0xff]  ;;  %p872_p1 = scmp.lt.s32.totalorder %s870_s17, %s864_s15 }
  0x1c   : > { %798 = vmatprep.subr.bf16.mxu1 %v928_v5 }
  0x1d   : > { %p873_p2 = por %p872_p1, %p871_p0 }
  0x1f   : > { %800 = vmatpush3.bf16.msra.mxu1 %v799_v51  ;;  %p874_p3 = pnand %p873_p2, %p867_p13 }
  0x20   : > { %771 = vmatpush3.bf16.xpose.msk.msra.mxu0 %vm1028_vm1, %v769_v12  ;;  %801 = vmatprep.subr.bf16.mxu1 %v928_v5  ;;  %v651_v12 = vld [vmem:[%s1228_s6] ss:$0 sm:$0xff] }
  0x21   : > { %772 = vmatprep.subr.bf16.mxu0 %v928_v5 }
  0x23   : > { %803 = vmatpush3.bf16.msra.mxu1 %v802_v54 }
  0x24   : > { %804 = vmatprep.subr.bf16.mxu1 %v928_v5 }
  0x27   : > { %806 = vmatpush3.bf16.msra.mxu1 %v805_v57 }
  0x28   : > { %775 = vmatpush3.bf16.xpose.msk.msra.mxu0 %vm1028_vm1, %v773_v15  ;;  %807 = vmatprep.subr.bf16.mxu1 %v928_v5 }
  0x29   : > { %776 = vmatprep.subr.bf16.mxu0 %v928_v5 }
  0x2b   : > { %809 = vmatpush3.bf16.msra.mxu1 %v808_v60 }
  0x2c   : > { %810 = vmatprep.subr.bf16.mxu1 %v928_v5 }
  0x2f   : > { %812 = vmatpush3.bf16.msra.mxu1 %v811_v63 }
  0x30   : > { %779 = vmatpush3.bf16.xpose.msk.msra.mxu0 %vm1028_vm1, %v777_v18  ;;  %813 = vmatprep.subr.bf16.mxu1 %v928_v5 }
  0x31   : > { %780 = vmatprep.subr.bf16.mxu0 %v928_v5 }
  0x38   : > { %783 = vmatpush3.bf16.xpose.msk.msra.mxu0 %vm1028_vm1, %v781_v21 }
  0x39   : > { %784 = vmatprep.subr.bf16.mxu0 %v928_v5 }
  0x40   : > { %787 = vmatpush3.bf16.xpose.msk.msra.mxu0 %vm1028_vm1, %v785_v29 }
  0x41   : > { %788 = vmatprep.subr.bf16.mxu0 %v928_v5 }
  0x48   : > { %791 = vmatpush3.bf16.xpose.msk.msra.mxu0 %vm1028_vm1, %v789_v33 }
  0xa8   : > { %v278_v22 = vpop.xlane.xlu0 %277 }
  0xa9   : > { %v280_v23 = vmul.f32 0.03125, %v278_v22 }
  0xab   : > { %v281_v24 = vsub.f32 %v274_v0, %v280_v23  ;;  %v471_v0 = vld [vmem:[%s1227_s5 + $0x70] sm:$0xff] }
  0xac   : > { %v814_v2 = vpack.c.bf16 %v472_v1, %v471_v0 }
  0xad   : > { %v282_v25 = vmul.f32 %v281_v24, %v281_v24 }
  0xae   : > { %815 = vmatpush3.bf16.msra.mxu1 %v814_v2 }
  0xaf   : > { %v283_v26 = vsel %vm275_vm0, %v282_v25, 0.0 }
  0xb0   : > { %284 = vadd.xlane.f32.xlu0 %v283_v26 }
 0x13d   : > { %v285_v34 = vpop.xlane.xlu0 %284 }
 0x13e   : > { %v286_v35 = vmul.f32 0.03125, %v285_v34 }
 0x140   : > { %v287_v36 = vadd.f32 1e-05, %v286_v35 }
 0x142   : > { %858 = vrsqrt.f32 %v287_v36 }
 0x14c   : > { %v859_v37 = vpop.eup %858 }
 0x14d   : > { %v289_v39 = vmul.f32 %v859_v37, %v281_v24 }
 0x14f   : > { %v297_v41 = vmul.f32 %v630_v38, %v289_v39 }
 0x151   : > { %v305_v42 = vadd.f32 %v631_v40, %v297_v41 }
 0x153   : > { %723 = vmatmul.mubr.msk.f32.vlgmr.msra.gmra.mrb[0].mxu0 %vm275_vm0, %v305_v42 }
 0x226   : > { %v446_v4 = vpop.f32.mrb[0].mxu0 }
 0x227   : > { %v447_v6 = vadd.f32 %v632_v3, %v446_v4  ;;  %v724_v7 = vpop.f32.mrb[1].mxu0 }
 0x229   : > { %v650_v5 = vmul.f32 -1.442695, %v447_v6 }
 0x22b   : > { %860 = vpow2.f32 %v650_v5 }
 0x235   : > { %v861_v8 = vpop.eup %860 }
 0x236   : > { %v453_v9 = vadd.f32 1.0, %v861_v8 }
 0x238   : > { %862 = vrcp.f32 %v453_v9 }
 0x242   : > { %v863_v10 = vpop.eup %862 }
 0x243   : > { %v456_v11 = vmul.f32 %v863_v10, %v447_v6 }
 0x245   : > { %758 = vmatmul.mubr.f32.vlgmr.msra.gmra.mrb[0].mxu1 %v456_v11 }
 0x318   : > { %v546_v13 = vpop.f32.mrb[0].mxu1 }
 0x319   : > { %v547_v14 = vadd.f32 %v651_v12, %v546_v13  ;;  %v759_v15 = vpop.f32.mrb[1].mxu1 }
 0x31b   : > { %550 = vst.msk [vmem:[%s269_s23] sm:$0xff] %vm275_vm0, %v547_v14 }
 0x31c   : > { %877 = shalt.err (!%p874_p3)
}
 0x31d   : > { %s878_s18 = scalar_lea.hbm %s1179_s13, 128  ;;  %s882_s21 = scalar_lea.hbm %s1229_s7, 256 }
 0x31e   : > { %p879_p4 = scmp.ne.s32.totalorder %s1179_s13, %s878_s18  ;;  %p883_p9 = scmp.lt.u32.totalorder %s1179_s13, %s1229_s7 }
 0x31f   : > { %p884_p10 = scmp.lt.u32.totalorder %s882_s21, %s878_s18  ;;  %p886_p12 = scmp.lt.u32.totalorder %s878_s18, %s1179_s13 }
 0x320   : > { %p880_p7 = pnand %p879_p4, %p1010_p5 }
 0x321   : > { %p885_p11 = por %p884_p10, %p883_p9 }
 0x322   : > { %p881_p8 = pneg %p880_p7 }
 0x323   : > { %p887_p13 = por %p886_p12, %p885_p11 }
 0x325   : > { %p888_p0 = pnand %p887_p13, %p881_p8 }
 0x327   : > { %891 = shalt.err (!%p888_p0)
}
 0x328   : > { %816 = dma.vmem_to_hbm [thread:$0]  (%p1010_p5), %s1181_s29, 128, %s1179_s13, %s552_s14  }
 0x329 PF: > { %p822_p1 = scmp.ge.s32.totalorder %s926_s27, 2  ;;  %s577_s8 = sand.u32 1, %s914_s24  }
 0x32a   : > { %s578_s9 = scalar_lea.sflag [#allocation3], %s577_s8 }
 0x32b   : > { %p819_p2 = pnand %p822_p1, %p1014_p6 }
 0x32d   : > { %909 = dma.done.wait (!%p819_p2), %s578_s9, 128  }
 0x32e   : > { %911 = vsyncadd (!%p819_p2), %s578_s9, 4294967168  ;;  %p17_p3 = scmp.ge.s32.totalorder %s997_s30, 4   ;;  %s1234_s24 = smov %s918_s25 }
 0x32f   : > { %s1235_s25 = smov %s922_s26  ;;  %s1236_s26 = smov %s1008_s10 }
 0x330   : > { %s1237_s27 = smov %s997_s30  ;;  %19 = sbr.rel (!%p17_p3) target bundleno = 3 (0x3), region = 83 }
 0x337   :  { %583 = vsyncpa [#allocation3], 1 }
 0x338   :  { %585 = vsyncpa [#allocation3 + $0x1], 1 }

</bundles_post_ra>
